<compile_context>
chip_gen: v5e
topology: v5e:2x2
jax: 0.10.0
libtpu: 0.0.40
codegen_flags: <defaults>
</compile_context>

<pallas_src>
import jax
import jax.numpy as jnp
from jax.experimental import pallas as pl
from jax.experimental.pallas import tpu as pltpu

EPS = 1e-5


def _pack_w(w):
    """PyTorch ConvTranspose1d weight (Cin, Cout, K) -> (Cout, K*Cin) for the fused matmul."""
    cin, cout, k = w.shape
    return jnp.transpose(w, (1, 2, 0)).reshape(cout, k * cin)


def _shifted(h, delta, total):
    """s[:, p] = h[:, (p + delta) mod total]; caller masks the per-batch boundary lanes."""
    if total % 128 == 0 and h.dtype.itemsize == 4:
        # XLU lane rotate (separate issue slot from the VALU), no activation-sized copy.
        return pltpu.roll(h, shift=(-delta) % total, axis=1)
    # Lane-unaligned fallback (tiny shapes): static slice + zero column (proven lowering).
    zcol = jnp.zeros((h.shape[0], 1), h.dtype)
    if delta == 1:
        return jnp.concatenate([h[:, 1:], zcol], axis=1)
    return jnp.concatenate([zcol, h[:, :-1]], axis=1)


def _make_decoder_kernel(L, mm_dtype):
    def kernel(x_ref, w0_ref, g0_ref, be0_ref, w1_ref, g1_ref, be1_ref, w2b_ref, out_ref):
        BL = x_ref.shape[-1]
        # Per-batch position along L of every flattened lane (built once, broadcast (1, BL)).
        t = jax.lax.broadcasted_iota(jnp.int32, (1, BL), 1) % L
        last_t = t == (L - 1)   # tap x[t+1] is zero here (also kills cross-batch roll leak)
        first_t = t == 0        # tap x[t-1] is zero here

        def conv3(h, w_ref, fold_bias=False):
            # Fused 3-tap ConvTranspose1d(k=3, s=1, p=1): one (O, 3C[+1]) x (3C[+1], BL) matmul.
            nxt = jnp.where(last_t, 0.0, _shifted(h, +1, BL))   # h[.., t+1]
            prv = jnp.where(first_t, 0.0, _shifted(h, -1, BL))  # h[.., t-1]
            parts = [nxt, h, prv]
            if fold_bias:
                parts.append(jnp.ones((1, BL), h.dtype))        # ones row <-> bias column in w
            slab = jnp.concatenate(parts, axis=0).astype(mm_dtype)
            return jnp.dot(w_ref[...], slab, preferred_element_type=jnp.float32)

        def bn_relu(y, g_ref, be_ref):
            # Training-mode BatchNorm1d: biased stats over the whole B*L lane axis,
            # centered two-pass variance (no E[y^2]-E[y]^2 cancellation), fused FMA + ReLU.
            m = jnp.mean(y, axis=1, keepdims=True)
            yc = y - m
            var = jnp.mean(yc * yc, axis=1, keepdims=True)
            scale = g_ref[...] * jax.lax.rsqrt(var + EPS)
            return jnp.maximum(yc * scale + be_ref[...], 0.0)

        x = x_ref[...].astype(jnp.float32)
        # Layer 0: ConvT(Cin -> 2*hidden)  [bias dropped: cancelled by BN]  + BN + ReLU
        h = bn_relu(conv3(x, w0_ref), g0_ref, be0_ref)
        # Layer 1: ConvT(2*hidden -> hidden)  [bias dropped: cancelled by BN]  + BN + ReLU
        h = bn_relu(conv3(h, w1_ref), g1_ref, be1_ref)
        # Layer 2: ConvT(hidden -> Cout) + bias (folded into the matmul) + Sigmoid
        z = conv3(h, w2b_ref, fold_bias=True)
        out_ref[...] = (0.5 * jnp.tanh(0.5 * z) + 0.5).astype(out_ref.dtype)

    return kernel


def decoder_forward(x_ncl, params, *, mm_dtype=jnp.bfloat16):
    """x_ncl: (B, Cin, L) float32 exactly like the PyTorch module; returns (B, Cout, L) f32.

    mm_dtype controls the MXU operand dtype (bf16 default; f32 for bit-tight validation).
    Accumulation and all elementwise / BatchNorm math are always f32.
    """
    B, Cin, L = x_ncl.shape
    BL = B * L

    w0p = _pack_w(params['w0']).astype(mm_dtype)
    w1p = _pack_w(params['w1']).astype(mm_dtype)
    w2p = _pack_w(params['w2'])
    cout = w2p.shape[0]
    w2b = jnp.concatenate([w2p, params['b2'].reshape(cout, 1)], axis=1).astype(mm_dtype)

    h2, hid = w0p.shape[0], w1p.shape[0]
    g0 = params['g0'].reshape(h2, 1)
    be0 = params['be0'].reshape(h2, 1)
    g1 = params['g1'].reshape(hid, 1)
    be1 = params['be1'].reshape(hid, 1)
    # b0 / b1 intentionally NOT passed: a per-channel bias immediately followed by
    # training-mode BatchNorm is cancelled exactly by the mean subtraction.

    # Layout plumbing (outside the kernel): (B, Cin, L) -> (Cin, B*L) so batch rides the lanes.
    x_cbl = jnp.transpose(x_ncl, (1, 0, 2)).reshape(Cin, BL)

    vmem = pl.BlockSpec(memory_space=pltpu.MemorySpace.VMEM)
    # Everything fits VMEM at these shapes -> one gridless invocation.
    # TODO(synk): for HBM-resident B*L, tile the lane axis with a grid (tiles a multiple of 128),
    # two-phase BatchNorm (per-channel sum/sumsq accumulation pass marked "arbitrary", then a
    # normalize+activate pass), halo handling for the +-1 taps, and a "parallel" tile axis for
    # v7x's 2nd TensorCore; re-derive the tile budget against v7x's 32 MiB scoped / 64 MiB VMEM.
    out = pl.pallas_call(
        _make_decoder_kernel(L, mm_dtype),
        out_shape=jax.ShapeDtypeStruct((cout, BL), jnp.float32),
        in_specs=[vmem] * 8,
        out_specs=vmem,
    )(x_cbl, w0p, g0, be0, w1p, g1, be1, w2b)

    return jnp.transpose(out.reshape(cout, B, L), (1, 0, 2))


def init_params(key, input_channels, hidden_size, output_channels):
    """Deterministic init mirroring the PyTorch module's parameter shapes (PyTorch layout)."""
    h2 = hidden_size * 2
    ks = jax.random.split(key, 6)

    def conv_init(kw, kb, cin, cout):
        bound = 1.0 / jnp.sqrt(jnp.float32(cin * 3))
        w = jax.random.uniform(kw, (cin, cout, 3), jnp.float32, -bound, bound)
        b = jax.random.uniform(kb, (cout,), jnp.float32, -bound, bound)
        return w, b

    w0, b0 = conv_init(ks[0], ks[1], input_channels, h2)
    w1, b1 = conv_init(ks[2], ks[3], h2, hidden_size)
    w2, b2 = conv_init(ks[4], ks[5], hidden_size, output_channels)
    return dict(
        w0=w0, b0=b0, g0=jnp.ones((h2,), jnp.float32), be0=jnp.zeros((h2,), jnp.float32),
        w1=w1, b1=b1, g1=jnp.ones((hidden_size,), jnp.float32),
        be1=jnp.zeros((hidden_size,), jnp.float32),
        w2=w2, b2=b2,
    )


def decoder_reference(x_ncl, params):
    """Faithful pure-JAX reference of the PyTorch forward (biases included, two-pass BN)."""
    def convt(x, w, b):  # x (B,C,L), w (Cin,Cout,3), b (Cout,)
        B, C, L = x.shape
        xp = jnp.pad(x, ((0, 0), (0, 0), (1, 1)))
        acc = b[None, :, None]
        for k in range(3):
            acc = acc + jnp.einsum('bcl,co->bol', xp[:, :, 2 - k:2 - k + L], w[:, :, k])
        return acc

    def bn(y, g, be):
        m = jnp.mean(y, axis=(0, 2), keepdims=True)
        v = jnp.mean((y - m) ** 2, axis=(0, 2), keepdims=True)  # biased, as PyTorch BN
        return (y - m) * jax.lax.rsqrt(v + EPS) * g[None, :, None] + be[None, :, None]

    h = jnp.maximum(bn(convt(x_ncl, params['w0'], params['b0']), params['g0'], params['be0']), 0.0)
    h = jnp.maximum(bn(convt(h, params['w1'], params['b1']), params['g1'], params['be1']), 0.0)
    return jax.nn.sigmoid(convt(h, params['w2'], params['b2']))


if __name__ == "__main__":
    input_channels, hidden_size, output_channels = 4, 8, 4
    B, L = 2, 64   # B*L = 128: lane-dense output slab, XLU-roll tap path exercised

    key = jax.random.PRNGKey(0)
    kx, kp = jax.random.split(key)
    x = jax.random.normal(kx, (B, input_channels, L), jnp.float32)
    params = init_params(kp, input_channels, hidden_size, output_channels)

    y_ref = decoder_reference(x, params)

    # Bit-tight path: f32 MXU operands vs. the PyTorch-faithful pure-JAX reference.
    y_f32 = jax.block_until_ready(decoder_forward(x, params, mm_dtype=jnp.float32))
    assert y_f32.shape == (B, output_channels, L)
    assert jnp.allclose(y_f32, y_ref, atol=1e-4, rtol=1e-4), "f32 kernel mismatch vs reference"

    # Production path: bf16 MXU operands, f32 accumulation (post-sigmoid drift << 4e-2 here).
    y_bf16 = jax.block_until_ready(decoder_forward(x, params))
    assert y_bf16.shape == (B, output_channels, L)
    assert jnp.allclose(y_bf16, y_ref, atol=4e-2), "bf16 kernel drifted from f32 reference"

    print("KERNEL_OK")
</pallas_src>

<mosaic_0001>
module attributes {stable_mosaic.version = 11 : i64} {
  func.func @kernel(%arg0: memref<4x128xf32, #tpu.memory_space<vmem>>, %arg1: memref<16x12xf32, #tpu.memory_space<vmem>>, %arg2: memref<16x1xf32, #tpu.memory_space<vmem>>, %arg3: memref<16x1xf32, #tpu.memory_space<vmem>>, %arg4: memref<8x48xf32, #tpu.memory_space<vmem>>, %arg5: memref<8x1xf32, #tpu.memory_space<vmem>>, %arg6: memref<8x1xf32, #tpu.memory_space<vmem>>, %arg7: memref<4x25xf32, #tpu.memory_space<vmem>>, %arg8: memref<4x128xf32, #tpu.memory_space<vmem>>) attributes {dimension_semantics = [], scalar_prefetch = 0 : i64, scratch_operands = 0 : i64, tpu.core_type = #tpu.core_type<tc>} {
    %0 = tpu.iota {dimensions = array<i32: 1>} : vector<1x128xi32>
    %c64_i32 = arith.constant 64 : i32
    %c0_i32 = arith.constant 0 : i32
    %1 = arith.cmpi eq, %c64_i32, %c0_i32 : i32
    %c1_i32 = arith.constant 1 : i32
    %2 = arith.select %1, %c1_i32, %c64_i32 : i32
    %3 = vector.broadcast %2 : i32 to vector<1x128xi32>
    %4 = arith.remsi %0, %3 : vector<1x128xi32>
    %c0_i32_0 = arith.constant 0 : i32
    %5 = vector.broadcast %c0_i32_0 : i32 to vector<1x128xi32>
    %6 = arith.cmpi ne, %4, %5 : vector<1x128xi32>
    %c0_i32_1 = arith.constant 0 : i32
    %7 = vector.broadcast %c0_i32_1 : i32 to vector<1x128xi32>
    %8 = arith.cmpi slt, %4, %7 : vector<1x128xi32>
    %c0_i32_2 = arith.constant 0 : i32
    %9 = arith.cmpi slt, %2, %c0_i32_2 : i32
    %10 = vector.broadcast %9 : i1 to vector<1x128xi1>
    %11 = vector.broadcast %10 : vector<1x128xi1> to vector<1x128xi1>
    %12 = arith.xori %8, %11 : vector<1x128xi1>
    %13 = arith.andi %12, %6 : vector<1x128xi1>
    %14 = vector.broadcast %2 : i32 to vector<1x128xi32>
    %15 = arith.addi %4, %14 : vector<1x128xi32>
    %16 = arith.select %13, %15, %4 : vector<1x128xi1>, vector<1x128xi32>
    %c63_i32 = arith.constant 63 : i32
    %17 = vector.broadcast %c63_i32 : i32 to vector<1x128xi32>
    %18 = arith.cmpi eq, %16, %17 : vector<1x128xi32>
    %c0_i32_3 = arith.constant 0 : i32
    %19 = vector.broadcast %c0_i32_3 : i32 to vector<1x128xi32>
    %20 = arith.cmpi eq, %16, %19 : vector<1x128xi32>
    %c0 = arith.constant 0 : index
    %c0_4 = arith.constant 0 : index
    %21 = vector.load %arg0[%c0, %c0_4] : memref<4x128xf32, #tpu.memory_space<vmem>>, vector<4x128xf32>
    %c127_i32 = arith.constant 127 : i32
    %22 = tpu.dynamic_rotate %21 by %c127_i32 dim 1 : vector<4x128xf32>, i32 -> vector<4x128xf32>
    %cst = arith.constant 0.000000e+00 : f32
    %23 = vector.shape_cast %18 : vector<1x128xi1> to vector<1x128xi1>
    %24 = vector.broadcast %23 : vector<1x128xi1> to vector<4x128xi1>
    %25 = vector.broadcast %cst : f32 to vector<4x128xf32>
    %26 = arith.select %24, %25, %22 : vector<4x128xi1>, vector<4x128xf32>
    %c1_i32_5 = arith.constant 1 : i32
    %27 = tpu.dynamic_rotate %21 by %c1_i32_5 dim 1 : vector<4x128xf32>, i32 -> vector<4x128xf32>
    %cst_6 = arith.constant 0.000000e+00 : f32
    %28 = vector.shape_cast %20 : vector<1x128xi1> to vector<1x128xi1>
    %29 = vector.broadcast %28 : vector<1x128xi1> to vector<4x128xi1>
    %30 = vector.broadcast %cst_6 : f32 to vector<4x128xf32>
    %31 = arith.select %29, %30, %27 : vector<4x128xi1>, vector<4x128xf32>
    %32 = tpu.concatenate %26, %21, %31 in 0 : vector<4x128xf32>, vector<4x128xf32>, vector<4x128xf32> -> vector<12x128xf32>
    %c0_7 = arith.constant 0 : index
    %c0_8 = arith.constant 0 : index
    %33 = vector.load %arg1[%c0_7, %c0_8] : memref<16x12xf32, #tpu.memory_space<vmem>>, vector<16x12xf32>
    %cst_9 = arith.constant dense<0.000000e+00> : vector<16x128xf32>
    %34 = tpu.matmul %33, %32, %cst_9 {dimension_numbers = #tpu.dot_dimension_numbers<[1], [0], [0], [1], [0, 0, 1, 1], [], []>} : vector<16x12xf32>, vector<12x128xf32>, vector<16x128xf32> -> vector<16x128xf32>
    %cst_10 = arith.constant dense<0.000000e+00> : vector<16xf32>
    %35 = vector.multi_reduction <add>, %34, %cst_10 [1] : vector<16x128xf32> to vector<16xf32>
    %36 = vector.shape_cast %35 : vector<16xf32> to vector<16x1xf32>
    %cst_11 = arith.constant 1.280000e+02 : f32
    %37 = vector.broadcast %cst_11 : f32 to vector<16x1xf32>
    %38 = arith.divf %36, %37 : vector<16x1xf32>
    %39 = vector.broadcast %38 : vector<16x1xf32> to vector<16x128xf32>
    %40 = arith.subf %34, %39 : vector<16x128xf32>
    %41 = arith.mulf %40, %40 : vector<16x128xf32>
    %cst_12 = arith.constant dense<0.000000e+00> : vector<16xf32>
    %42 = vector.multi_reduction <add>, %41, %cst_12 [1] : vector<16x128xf32> to vector<16xf32>
    %43 = vector.shape_cast %42 : vector<16xf32> to vector<16x1xf32>
    %cst_13 = arith.constant 1.280000e+02 : f32
    %44 = vector.broadcast %cst_13 : f32 to vector<16x1xf32>
    %45 = arith.divf %43, %44 : vector<16x1xf32>
    %c0_14 = arith.constant 0 : index
    %c0_15 = arith.constant 0 : index
    %46 = vector.load %arg2[%c0_14, %c0_15] : memref<16x1xf32, #tpu.memory_space<vmem>>, vector<16x1xf32>
    %cst_16 = arith.constant 9.99999974E-6 : f32
    %47 = vector.broadcast %cst_16 : f32 to vector<16x1xf32>
    %48 = arith.addf %45, %47 : vector<16x1xf32>
    %49 = math.rsqrt %48 : vector<16x1xf32>
    %50 = arith.mulf %46, %49 : vector<16x1xf32>
    %51 = vector.broadcast %50 : vector<16x1xf32> to vector<16x128xf32>
    %52 = arith.mulf %40, %51 : vector<16x128xf32>
    %c0_17 = arith.constant 0 : index
    %c0_18 = arith.constant 0 : index
    %53 = vector.load %arg3[%c0_17, %c0_18] : memref<16x1xf32, #tpu.memory_space<vmem>>, vector<16x1xf32>
    %54 = vector.broadcast %53 : vector<16x1xf32> to vector<16x128xf32>
    %55 = arith.addf %52, %54 : vector<16x128xf32>
    %cst_19 = arith.constant 0.000000e+00 : f32
    %56 = vector.broadcast %cst_19 : f32 to vector<16x128xf32>
    %57 = arith.maximumf %55, %56 : vector<16x128xf32>
    %c127_i32_20 = arith.constant 127 : i32
    %58 = tpu.dynamic_rotate %57 by %c127_i32_20 dim 1 : vector<16x128xf32>, i32 -> vector<16x128xf32>
    %cst_21 = arith.constant 0.000000e+00 : f32
    %59 = vector.shape_cast %18 : vector<1x128xi1> to vector<1x128xi1>
    %60 = vector.broadcast %59 : vector<1x128xi1> to vector<16x128xi1>
    %61 = vector.broadcast %cst_21 : f32 to vector<16x128xf32>
    %62 = arith.select %60, %61, %58 : vector<16x128xi1>, vector<16x128xf32>
    %c1_i32_22 = arith.constant 1 : i32
    %63 = tpu.dynamic_rotate %57 by %c1_i32_22 dim 1 : vector<16x128xf32>, i32 -> vector<16x128xf32>
    %cst_23 = arith.constant 0.000000e+00 : f32
    %64 = vector.shape_cast %20 : vector<1x128xi1> to vector<1x128xi1>
    %65 = vector.broadcast %64 : vector<1x128xi1> to vector<16x128xi1>
    %66 = vector.broadcast %cst_23 : f32 to vector<16x128xf32>
    %67 = arith.select %65, %66, %63 : vector<16x128xi1>, vector<16x128xf32>
    %68 = tpu.concatenate %62, %57, %67 in 0 : vector<16x128xf32>, vector<16x128xf32>, vector<16x128xf32> -> vector<48x128xf32>
    %c0_24 = arith.constant 0 : index
    %c0_25 = arith.constant 0 : index
    %69 = vector.load %arg4[%c0_24, %c0_25] : memref<8x48xf32, #tpu.memory_space<vmem>>, vector<8x48xf32>
    %cst_26 = arith.constant dense<0.000000e+00> : vector<8x128xf32>
    %70 = tpu.matmul %69, %68, %cst_26 {dimension_numbers = #tpu.dot_dimension_numbers<[1], [0], [0], [1], [0, 0, 1, 1], [], []>} : vector<8x48xf32>, vector<48x128xf32>, vector<8x128xf32> -> vector<8x128xf32>
    %cst_27 = arith.constant dense<0.000000e+00> : vector<8xf32>
    %71 = vector.multi_reduction <add>, %70, %cst_27 [1] : vector<8x128xf32> to vector<8xf32>
    %72 = vector.shape_cast %71 : vector<8xf32> to vector<8x1xf32>
    %cst_28 = arith.constant 1.280000e+02 : f32
    %73 = vector.broadcast %cst_28 : f32 to vector<8x1xf32>
    %74 = arith.divf %72, %73 : vector<8x1xf32>
    %75 = vector.broadcast %74 : vector<8x1xf32> to vector<8x128xf32>
    %76 = arith.subf %70, %75 : vector<8x128xf32>
    %77 = arith.mulf %76, %76 : vector<8x128xf32>
    %cst_29 = arith.constant dense<0.000000e+00> : vector<8xf32>
    %78 = vector.multi_reduction <add>, %77, %cst_29 [1] : vector<8x128xf32> to vector<8xf32>
    %79 = vector.shape_cast %78 : vector<8xf32> to vector<8x1xf32>
    %cst_30 = arith.constant 1.280000e+02 : f32
    %80 = vector.broadcast %cst_30 : f32 to vector<8x1xf32>
    %81 = arith.divf %79, %80 : vector<8x1xf32>
    %c0_31 = arith.constant 0 : index
    %c0_32 = arith.constant 0 : index
    %82 = vector.load %arg5[%c0_31, %c0_32] : memref<8x1xf32, #tpu.memory_space<vmem>>, vector<8x1xf32>
    %cst_33 = arith.constant 9.99999974E-6 : f32
    %83 = vector.broadcast %cst_33 : f32 to vector<8x1xf32>
    %84 = arith.addf %81, %83 : vector<8x1xf32>
    %85 = math.rsqrt %84 : vector<8x1xf32>
    %86 = arith.mulf %82, %85 : vector<8x1xf32>
    %87 = vector.broadcast %86 : vector<8x1xf32> to vector<8x128xf32>
    %88 = arith.mulf %76, %87 : vector<8x128xf32>
    %c0_34 = arith.constant 0 : index
    %c0_35 = arith.constant 0 : index
    %89 = vector.load %arg6[%c0_34, %c0_35] : memref<8x1xf32, #tpu.memory_space<vmem>>, vector<8x1xf32>
    %90 = vector.broadcast %89 : vector<8x1xf32> to vector<8x128xf32>
    %91 = arith.addf %88, %90 : vector<8x128xf32>
    %cst_36 = arith.constant 0.000000e+00 : f32
    %92 = vector.broadcast %cst_36 : f32 to vector<8x128xf32>
    %93 = arith.maximumf %91, %92 : vector<8x128xf32>
    %c127_i32_37 = arith.constant 127 : i32
    %94 = tpu.dynamic_rotate %93 by %c127_i32_37 dim 1 : vector<8x128xf32>, i32 -> vector<8x128xf32>
    %cst_38 = arith.constant 0.000000e+00 : f32
    %95 = vector.shape_cast %18 : vector<1x128xi1> to vector<1x128xi1>
    %96 = vector.broadcast %95 : vector<1x128xi1> to vector<8x128xi1>
    %97 = vector.broadcast %cst_38 : f32 to vector<8x128xf32>
    %98 = arith.select %96, %97, %94 : vector<8x128xi1>, vector<8x128xf32>
    %c1_i32_39 = arith.constant 1 : i32
    %99 = tpu.dynamic_rotate %93 by %c1_i32_39 dim 1 : vector<8x128xf32>, i32 -> vector<8x128xf32>
    %cst_40 = arith.constant 0.000000e+00 : f32
    %100 = vector.shape_cast %20 : vector<1x128xi1> to vector<1x128xi1>
    %101 = vector.broadcast %100 : vector<1x128xi1> to vector<8x128xi1>
    %102 = vector.broadcast %cst_40 : f32 to vector<8x128xf32>
    %103 = arith.select %101, %102, %99 : vector<8x128xi1>, vector<8x128xf32>
    %cst_41 = arith.constant 1.000000e+00 : f32
    %104 = vector.broadcast %cst_41 : f32 to vector<1x128xf32>
    %105 = tpu.concatenate %98, %93, %103, %104 in 0 : vector<8x128xf32>, vector<8x128xf32>, vector<8x128xf32>, vector<1x128xf32> -> vector<25x128xf32>
    %c0_42 = arith.constant 0 : index
    %c0_43 = arith.constant 0 : index
    %106 = vector.load %arg7[%c0_42, %c0_43] : memref<4x25xf32, #tpu.memory_space<vmem>>, vector<4x25xf32>
    %cst_44 = arith.constant dense<0.000000e+00> : vector<4x128xf32>
    %107 = tpu.matmul %106, %105, %cst_44 {dimension_numbers = #tpu.dot_dimension_numbers<[1], [0], [0], [1], [0, 0, 1, 1], [], []>} : vector<4x25xf32>, vector<25x128xf32>, vector<4x128xf32> -> vector<4x128xf32>
    %cst_45 = arith.constant 5.000000e-01 : f32
    %108 = vector.broadcast %cst_45 : f32 to vector<4x128xf32>
    %109 = arith.mulf %108, %107 : vector<4x128xf32>
    %110 = math.tanh %109 : vector<4x128xf32>
    %cst_46 = arith.constant 5.000000e-01 : f32
    %111 = vector.broadcast %cst_46 : f32 to vector<4x128xf32>
    %112 = arith.mulf %111, %110 : vector<4x128xf32>
    %cst_47 = arith.constant 5.000000e-01 : f32
    %113 = vector.broadcast %cst_47 : f32 to vector<4x128xf32>
    %114 = arith.addf %112, %113 : vector<4x128xf32>
    %c0_48 = arith.constant 0 : index
    %c0_49 = arith.constant 0 : index
    %115 = vector.load %arg8[%c0_48, %c0_49] : memref<4x128xf32, #tpu.memory_space<vmem>>, vector<4x128xf32>
    tpu.vector_store %arg8[%c0_48, %c0_49], %114 {strides = array<i32>} : memref<4x128xf32, #tpu.memory_space<vmem>>, vector<4x128xf32>,
    return
  }
}

</mosaic_0001>

<bundles_post_ra>
// kernel: tpu_custom_call.1
= control target key start
LH: loop header
LB: loop body
LE: loop exit
PB: predicated region body
PF: predicated region fallthrough
CT: control target
= control target key end

     0   :  { %s504_s0 = inlined_call_operand.vmem [shape: f32[4,128], index: 0, kind: input, shape index: {}]   ;;  %s505_s1 = inlined_call_operand.vmem [shape: f32[16,12], index: 1, kind: input, shape index: {}]   ;;  %s506_s2 = inlined_call_operand.vmem [shape: f32[16,1], index: 2, kind: input, shape index: {}]   ;;  %s507_s3 = inlined_call_operand.vmem [shape: f32[16,1], index: 3, kind: input, shape index: {}]   ;;  %s508_s4 = inlined_call_operand.vmem [shape: f32[8,48], index: 4, kind: input, shape index: {}]   ;;  %s509_s5 = inlined_call_operand.vmem [shape: f32[8,1], index: 5, kind: input, shape index: {}]   ;;  %s510_s6 = inlined_call_operand.vmem [shape: f32[8,1], index: 6, kind: input, shape index: {}]   ;;  %s511_s7 = inlined_call_operand.vmem [shape: f32[4,25], index: 7, kind: input, shape index: {}]   ;;  %s512_s8 = inlined_call_operand.hbm [shape: f32[4,128], index: 8, kind: output, shape index: {}]  }
   0x1   :  { %v46_v0 = vld [vmem:[%s504_s0] sm:$0xf] }
   0x2   :  { %13 = vsyncpa [#allocation3], 0  ;;  %s367_s29 = smov 1   ;;  %s368_s30 = smov 127   ;;  %v30_v1 = vlaneseq  ;;  %vm60_vm1 = vcmask 1043456   ;;  %v58_v7 = vrot.slane %v46_v0, 4 }
   0x3   :  { %52 = vrot.lane.b32.xlu0 %v46_v0, %s367_s29  ;;  %v63_v11 = vld [vmem:[%s505_s1 + $0x8] sm:$0xff]  ;;  %vm64_vm3 = vcmask 97280   ;;  %v62_v12 = vld [vmem:[%s505_s1] sm:$0xff]  ;;  %v369_v16 = vmov 128.0   ;;  %v370_v31 = vmov 0   ;;  %vm187_vm13 = vcmask 392192  }
   0x4   :  { %v31_v2 = vand.u32 127, %v30_v1  ;;  %331 = vrcp.f32 %v369_v16  ;;  %330 = vset.pattern.permute.xlu0 %v370_v31  ;;  %328 = vset.pattern.permute.xlu1 %v370_v31  ;;  %v159_v34 = vld [vmem:[%s507_s3 + $0x8] sm:$0xff]  ;;  %v120_v53 = vld [vmem:[%s506_s2] sm:$0xff]  ;;  %s372_s22 = smov [#allocation2]   ;;  %s293_s26 = sshll.u32 %s512_s8, 4  ;;  %s294_s26 = int_to_ptr.hbm [resolvable:$true] %s293_s26 }
   0x5   :  { %329 = vset.pattern.permute.xlu2 %v370_v31  ;;  %v121_v46 = vld [vmem:[%s506_s2 + $0x8] sm:$0xff]  ;;  %v158_v55 = vld [vmem:[%s507_s3] sm:$0xff]  ;;  %s291_s23 = sshll.u32 %s372_s22, 4  ;;  %s292_s23 = int_to_ptr.vmem [resolvable:$true] %s291_s23 }
   0x6   :  { %v36_v3 = vand.u32 63, %v31_v2 }
   0x8   :  { %vm423_vm0 = vcmp.eq.s32.totalorder %v36_v3, 0  ;;  %vm429_vm2 = vcmp.eq.s32.totalorder %v36_v3, 63 }
   0x9   :  { %vm305_vm11 = vmneg %vm423_vm0 }
   0xa   :  { %v332_v17 = vpop.eup %331  ;;  %vm309_vm12 = vmneg %vm429_vm2 }
   0xb   :  { %47 = vrot.lane.b32.xlu0 %v46_v0, %s368_s30  ;;  %v102_v18 = vmul.f32 128.0, %v332_v17  ;;  %vm106_vm4 = vweird.f32 %v332_v17 }
   0xd   :  { %v103_v19 = vsub.f32 1.0, %v102_v18 }
   0xf   :  { %v104_v20 = vmul.f32 %v332_v17, %v103_v19 }
  0x11   :  { %v105_v21 = vadd.f32 %v332_v17, %v104_v20 }
  0x13   :  { %v441_v22 = vsel %vm106_vm4, %v332_v17, %v105_v21  ;;  %vm253_vm4 = vcmask 203776  }
  0x75   :  { %v53_v5 = vpop.permute.xlu0 %52 }
  0x76   :  { %v56_v6 = vsel %vm423_vm0, 0.0, %v53_v5 }
  0x77   :  { %302 = vmatpush.msk.msra.mxu0 %vm60_vm1, %v56_v6  ;;  %320 = vmatpush.msk.msra.mxu3 %vm60_vm1, %v56_v6 }
  0x7d   :  { %v48_v9 = vpop.permute.xlu0 %47 }
  0x7e   :  { %v51_v10 = vsel %vm429_vm2, 0.0, %v48_v9  ;;  %v186_v9 = vld [vmem:[%s508_s4] sm:$0xff] }
  0x7f   :  { %v61_v13 = vsel %vm60_vm1, %v51_v10, %v58_v7 }
  0x80   :  { %89 = vmatpush.msra.mxu0 %v61_v13  ;;  %321 = vmatpush.msra.mxu3 %v61_v13 }
  0x81   :  { %304 = vmatmul.msk.f32.vlgmr.msra.gmra.mxu3 %vm64_vm3, %v63_v11  ;;  %303 = vmatmul.msk.f32.vlgmr.msra.gmra.mxu0 %vm64_vm3, %v62_v12  ;;  %vm257_vm3 = vcmask 1040384  }
  0xfe   :  { %v91_v15 = vpop.f32.mrf.mxu0 }
 0x104   :  { %v94_v14 = vpop.f32.mrf.mxu3 }
 0x105   :  { %99 = vadd.xlane.f32.xlu1 %v94_v14 }
 0x10d   :  { %97 = vadd.xlane.f32.xlu1 %v91_v15 }
 0x178   :  { %v100_v23 = vpop.xlane.xlu1 %99 }
 0x179   :  { %v109_v24 = vmul.f32 %v441_v22, %v100_v23 }
 0x17b   :  { %v111_v25 = vsub.f32 %v94_v14, %v109_v24 }
 0x17d   :  { %v113_v26 = vmul.f32 %v111_v25, %v111_v25 }
 0x17f   :  { %116 = vadd.xlane.f32.xlu2 %v113_v26 }
 0x180   :  { %v98_v27 = vpop.xlane.xlu1 %97 }
 0x181   :  { %v108_v28 = vmul.f32 %v441_v22, %v98_v27 }
 0x183   :  { %v110_v29 = vsub.f32 %v91_v15, %v108_v28 }
 0x185   :  { %v112_v30 = vmul.f32 %v110_v29, %v110_v29 }
 0x187   :  { %114 = vadd.xlane.f32.xlu2 %v112_v30 }
 0x19f   :  { %167 = vperm.xlu2 %329, %v159_v34  }
 0x1f2   :  { %v117_v32 = vpop.xlane.xlu2 %116 }
 0x1f3   :  { %v119_v33 = vmul.f32 %v117_v32, %v441_v22 }
 0x1f5   :  { %v123_v35 = vadd.f32 1e-05, %v119_v33 }
 0x1f7   :  { %333 = vrsqrt.f32 %v123_v35  ;;  %vm140_vm6 = vweird.f32 %v123_v35 }
 0x1fa   :  { %v115_v36 = vpop.xlane.xlu2 %114 }
 0x1fb   :  { %v118_v37 = vmul.f32 %v115_v36, %v441_v22  ;;  %v252_v36 = vld [vmem:[%s511_s7] sm:$0xf] }
 0x1fd   :  { %v334_v38 = vpop.eup %333  ;;  %v122_v39 = vadd.f32 1e-05, %v118_v37 }
 0x1fe   :  { %v135_v40 = vmul.f32 %v334_v38, %v123_v35  ;;  %vm141_vm5 = vweird.f32 %v334_v38 }
 0x1ff   :  { %335 = vrsqrt.f32 %v122_v39  ;;  %vm142_vm7 = vmor %vm140_vm6, %vm141_vm5  ;;  %vm130_vm9 = vweird.f32 %v122_v39 }
 0x200   :  { %v136_v41 = vmul.f32 %v334_v38, %v135_v40 }
 0x202   :  { %v137_v42 = vmul.f32 0.5, %v136_v41  ;;  %v168_v59 = vpop.permute.xlu2 %167 }
 0x204   :  { %v138_v43 = vsub.f32 1.5, %v137_v42 }
 0x205   :  { %v336_v44 = vpop.eup %335 }
 0x206   :  { %v125_v45 = vmul.f32 %v336_v44, %v122_v39  ;;  %v139_v47 = vmul.f32 %v334_v38, %v138_v43  ;;  %vm131_vm8 = vweird.f32 %v336_v44 }
 0x207   :  { %vm132_vm10 = vmor %vm130_vm9, %vm131_vm8 }
 0x208   :  { %v126_v48 = vmul.f32 %v336_v44, %v125_v45  ;;  %v143_v49 = vsel %vm142_vm7, %v334_v38, %v139_v47 }
 0x209   :  { %v145_v50 = vmul.f32 %v143_v49, %v121_v46 }
 0x20a   :  { %v127_v51 = vmul.f32 0.5, %v126_v48 }
 0x20b   :  { %153 = vperm.xlu0 %330, %v145_v50  }
 0x20c   :  { %v128_v52 = vsub.f32 1.5, %v127_v51 }
 0x20e   :  { %v129_v54 = vmul.f32 %v336_v44, %v128_v52 }
 0x210   :  { %v133_v56 = vsel %vm132_vm10, %v336_v44, %v129_v54 }
 0x211   :  { %v144_v57 = vmul.f32 %v133_v56, %v120_v53 }
 0x213   :  { %162 = vperm.xlu0 %330, %v158_v55   ;;  %148 = vperm.xlu1 %328, %v144_v57  }
 0x27d   :  { %v154_v58 = vpop.permute.xlu0 %153 }
 0x27e   :  { %v157_v60 = vmul.f32 %v154_v58, %v111_v25  ;;  %v219_v25 = vld [vmem:[%s509_s5] sm:$0xff] }
 0x280   :  { %v171_v61 = vadd.f32 %v168_v59, %v157_v60 }
 0x282   :  { %v173_v62 = vmax.f32 %v171_v61, 0.0 }
 0x284   :  { %176 = vrot.lane.b32.xlu1 %v173_v62, %s368_s30  ;;  %182 = vrot.lane.b32.xlu0 %v173_v62, %s367_s29 }
 0x285   :  { %v149_v63 = vpop.permute.xlu1 %148  ;;  %v163_v1 = vpop.permute.xlu0 %162 }
 0x286   :  { %v156_v0 = vmul.f32 %v149_v63, %v110_v29  ;;  %v371_v29 = vmov 1.0  }
 0x287   :  { %314 = vmatpush.msk.msra.mxu2 %vm257_vm3, %v371_v29 }
 0x288   :  { %v170_v2 = vadd.f32 %v163_v1, %v156_v0 }
 0x28a   :  { %v172_v3 = vmax.f32 %v170_v2, 0.0 }
 0x28c   :  { %180 = vrot.lane.b32.xlu2 %v172_v3, %s367_s29  ;;  %174 = vrot.lane.b32.xlu0 %v172_v3, %s368_s30 }
 0x2e6   :  { %v181_v6 = vpop.permute.xlu2 %180 }
 0x2f6   :  { %v183_v5 = vpop.permute.xlu0 %182  ;;  %v177_v7 = vpop.permute.xlu1 %176 }
 0x2f7   :  { %306 = vmatpush.msk.msra.mxu1 %vm305_vm11, %v183_v5 }
 0x2f9   :  { %308 = vmatpush.msk.msra.mxu1 %vm305_vm11, %v181_v6 }
 0x2fb   :  { %203 = vmatpush.msra.mxu1 %v173_v62 }
 0x2fd   :  { %204 = vmatpush.msra.mxu1 %v172_v3 }
 0x2fe   :  { %v175_v10 = vpop.permute.xlu0 %174 }
 0x2ff   :  { %310 = vmatpush.msk.msra.mxu1 %vm309_vm12, %v177_v7 }
 0x301   :  { %312 = vmatpush.msk.msra.mxu1 %vm309_vm12, %v175_v10 }
 0x302   :  { %313 = vmatmul.msk.f32.vlgmr.msra.gmra.mxu1 %vm187_vm13, %v186_v9 }
 0x37f   :  { %v208_v11 = vpop.f32.mrf.mxu1 }
 0x380   :  { %211 = vadd.xlane.f32.xlu2 %v208_v11 }
 0x3f3   :  { %v212_v12 = vpop.xlane.xlu2 %211 }
 0x3f4   :  { %v213_v13 = vmul.f32 %v212_v12, %v441_v22 }
 0x3f6   :  { %v214_v14 = vsub.f32 %v208_v11, %v213_v13 }
 0x3f8   :  { %v215_v15 = vmul.f32 %v214_v14, %v214_v14 }
 0x3fa   :  { %216 = vadd.xlane.f32.xlu1 %v215_v15 }
 0x46d   :  { %v217_v16 = vpop.xlane.xlu1 %216 }
 0x46e   :  { %v218_v17 = vmul.f32 %v217_v16, %v441_v22  ;;  %v238_v22 = vld [vmem:[%s510_s6] sm:$0xff] }
 0x470   :  { %v220_v18 = vadd.f32 1e-05, %v218_v17 }
 0x472   :  { %337 = vrsqrt.f32 %v220_v18  ;;  %vm227_vm15 = vweird.f32 %v220_v18 }
 0x478   :  { %v338_v19 = vpop.eup %337 }
 0x479   :  { %v222_v20 = vmul.f32 %v338_v19, %v220_v18  ;;  %vm228_vm14 = vweird.f32 %v338_v19 }
 0x47a   :  { %vm229_vm1 = vmor %vm227_vm15, %vm228_vm14 }
 0x47b   :  { %v223_v21 = vmul.f32 %v338_v19, %v222_v20 }
 0x47d   :  { %v224_v23 = vmul.f32 0.5, %v223_v21 }
 0x47f   :  { %v225_v24 = vsub.f32 1.5, %v224_v23 }
 0x481   :  { %v226_v26 = vmul.f32 %v338_v19, %v225_v24 }
 0x483   :  { %v230_v27 = vsel %vm229_vm1, %v338_v19, %v226_v26 }
 0x484   :  { %v231_v28 = vmul.f32 %v230_v27, %v219_v25 }
 0x486   :  { %234 = vperm.xlu0 %330, %v231_v28  }
 0x48e   :  { %241 = vperm.xlu0 %330, %v238_v22  }
 0x4f8   :  { %v235_v30 = vpop.permute.xlu0 %234 }
 0x4f9   :  { %v237_v31 = vmul.f32 %v235_v30, %v214_v14 }
 0x500   :  { %v242_v32 = vpop.permute.xlu0 %241 }
 0x501   :  { %v244_v33 = vadd.f32 %v242_v32, %v237_v31 }
 0x503   :  { %v245_v34 = vmax.f32 %v244_v33, 0.0 }
 0x505   :  { %249 = vrot.lane.b32.xlu0 %v245_v34, %s367_s29 }
 0x50d   :  { %246 = vrot.lane.b32.xlu0 %v245_v34, %s368_s30 }
 0x577   :  { %v250_v35 = vpop.permute.xlu0 %249 }
 0x578   :  { %316 = vmatpush.msk.msra.mxu2 %vm305_vm11, %v250_v35 }
 0x57a   :  { %275 = vmatpush.msra.mxu2 %v245_v34 }
 0x57f   :  { %v247_v37 = vpop.permute.xlu0 %246 }
 0x580   :  { %318 = vmatpush.msk.msra.mxu2 %vm309_vm12, %v247_v37 }
 0x581   :  { %319 = vmatmul.msk.f32.vlgmr.msra.gmra.mxu2 %vm253_vm4, %v252_v36 }
 0x604   :  { %v278_v38 = vpop.f32.mrf.mxu2 }
 0x605   :  { %v281_v39 = vmul.f32 0.5, %v278_v38 }
 0x607   :  { %339 = vtanh.f32 %v281_v39 }
 0x60d   :  { %v340_v40 = vpop.eup %339 }
 0x60e   :  { %v283_v4 = vmul.f32 0.5, %v340_v40 }
 0x610   :  { %v284_v41 = vadd.f32 0.5, %v283_v4 }
 0x612   :  { %285 = vst [vmem:[#allocation2] sm:$0xf] %v284_v41 }
 0x613   :  { %296 = dma.vmem_to_hbm [thread:$0]  %s292_s23, 64, %s294_s26, [#allocation3]  }
 0x614   :  { %365 = dma.done.wait [#allocation3], 64  }
 0x615   :  { %366 = vsyncadd [#allocation3], 4294967232 }
 0x616   :  { %301 = vsyncpa [#allocation3], 1 }

</bundles_post_ra>
